<compile_context>
chip_gen: v7x
topology: tpu7x:2x2x1
jax: 0.10.0
libtpu: 0.0.40
codegen_flags: <defaults>
</compile_context>

<pallas_src>
import jax
import jax.numpy as jnp
from jax import lax
from jax.experimental import pallas as pl
from jax.experimental.pallas import tpu as pltpu


def _round_up(x: int, m: int) -> int:
    return (x + m - 1) // m * m


def _make_codebook_kernel(tile_n: int, codebook_size: int, n_valid: int,
                          needs_mask: bool, temperature: float):
    K = codebook_size
    scale = 2.0 / temperature  # folds the "2 * x.e" factor and 1/T into a single multiply

    def kernel(x_ref, embed_ref, e2t_ref, q_ref, ind_ref, cls_ref):
        x = x_ref[...]        # [tile_n, D] f32
        e = embed_ref[...]    # [K, D]     f32 (resident, constant index_map)
        e2t = e2t_ref[...]    # [1, K]     f32 = ||embed||^2 / T (precomputed in wrapper)

        # Scaled, row-shifted confidence: s = (2 x @ e.T - ||e||^2) / T
        # (differs from confidence/T only by a per-row constant -> same argmax & softmax).
        xe = lax.dot_general(x, e, (((1,), (1,)), ((), ())),
                             preferred_element_type=jnp.float32)          # [tile_n, K]
        s = xe * scale - e2t

        # One row-max shared by the argmax path and the softmax shift.
        s_max = jnp.max(s, axis=-1, keepdims=True)                        # [tile_n, 1]
        k_iota = lax.broadcasted_iota(jnp.int32, s.shape, 1)              # [tile_n, K]
        # First-wins tie-break (matches torch .max(dim=-1).indices / jnp.argmax).
        idx_col = jnp.min(jnp.where(s == s_max, k_iota, K),
                          axis=-1, keepdims=True)                         # [tile_n, 1] int32
        onehot = (k_iota == idx_col).astype(jnp.float32)                  # [tile_n, K]

        # Dequantize via one-hot matmul (== F.embedding(embed_ind, embed)); exact in f32.
        q_ref[...] = jnp.dot(onehot, e, preferred_element_type=jnp.float32)

        # Lane-dense index row via the idle MXU: idx_row[0, r] = sum_k k * onehot[r, k]
        # (avoids a sublane->lane relayout of idx_col; values are exact integers in f32;
        # the +0.5 before the truncating cast is cheap insurance against any MXU rounding).
        k_row = lax.broadcasted_iota(jnp.int32, (1, K), 1).astype(jnp.float32)
        idx_row = lax.dot_general(k_row, onehot, (((1,), (1,)), ((), ())),
                                  preferred_element_type=jnp.float32)     # [1, tile_n]
        ind_ref[...] = (idx_row + 0.5).astype(jnp.int32).reshape(1, 1, tile_n)

        # Softmax over the codebook axis; emit per-tile column sums (class-prob partials).
        p = jnp.exp(s - s_max)
        denom = jnp.sum(p, axis=-1, keepdims=True)
        p = p * pl.reciprocal(denom, approx=True)                         # EUP vrcp
        if needs_mask:
            # Zero out zero-padded rows so they do not contribute to the class-prob mean.
            row = (lax.broadcasted_iota(jnp.int32, (tile_n, 1), 0)
                   + pl.program_id(0) * tile_n)
            p = jnp.where(row < n_valid, p, 0.0)
        cls_ref[...] = jnp.sum(p, axis=0, keepdims=True).reshape(1, 1, K)

    return kernel


def euclidean_codebook_forward(x, embed, temperature: float = 0.9, tile_n: int = 512):
    """x: [B, T, D] float32, embed: [K, D] float32."""
    B, T, D = x.shape
    K = embed.shape[0]
    N = B * T

    xf = x.reshape(N, D).astype(jnp.float32)
    ef = embed.astype(jnp.float32)
    # Hoisted out of the grid loop: ||embed||^2 / temperature, resident [1, K] input.
    e2t = (jnp.sum(ef * ef, axis=1) / temperature)[None, :]

    # Adapt the row tile: multiple of 8 sublanes, no larger than the rounded-up row count
    # (avoids padding tiny inputs up to a huge tile while keeping big tiles for real shapes).
    tile_n = max(8, min(_round_up(tile_n, 8), _round_up(N, 8)))

    n_pad = _round_up(N, tile_n)
    if n_pad != N:
        xf = jnp.pad(xf, ((0, n_pad - N), (0, 0)))
    num_tiles = n_pad // tile_n

    kernel = _make_codebook_kernel(tile_n, K, N, n_pad != N, temperature)

    q, ind, cls = pl.pallas_call(
        kernel,
        out_shape=(
            jax.ShapeDtypeStruct((n_pad, D), jnp.float32),             # quantize (flat, padded)
            jax.ShapeDtypeStruct((num_tiles, 1, tile_n), jnp.int32),   # embed_ind (lane-dense)
            jax.ShapeDtypeStruct((num_tiles, 1, K), jnp.float32),      # class-prob partial sums
        ),
        grid_spec=pltpu.PrefetchScalarGridSpec(
            num_scalar_prefetch=0,
            grid=(num_tiles,),
            in_specs=[
                pl.BlockSpec((tile_n, D), lambda i: (i, 0)),   # x tile
                pl.BlockSpec((K, D), lambda i: (0, 0)),        # full codebook, resident
                pl.BlockSpec((1, K), lambda i: (0, 0)),        # ||embed||^2 / T, resident
            ],
            out_specs=[
                pl.BlockSpec((tile_n, D), lambda i: (i, 0)),
                pl.BlockSpec((1, 1, tile_n), lambda i: (i, 0, 0)),
                pl.BlockSpec((1, 1, K), lambda i: (i, 0, 0)),
            ],
        ),
        compiler_params=pltpu.CompilerParams(
            # No cross-step carry -> fully parallel grid (shards across TCs on v7x).
            dimension_semantics=("parallel",),
            vmem_limit_bytes=32 * 1024 * 1024,
        ),
    )(xf, ef, e2t)

    quantize = q[:N].reshape(B, T, D)
    embed_ind = ind.reshape(n_pad)[:N].reshape(B, T)
    # Tiny final reduction (num_tiles x K) done in plain JAX.
    class_probs = jnp.sum(cls, axis=(0, 1)) / float(N)
    diversity_loss = jnp.sum(class_probs * jnp.log(class_probs + 1e-6))
    return quantize, embed_ind, diversity_loss


def _reference_forward(x, embed, temperature: float = 0.9):
    B, T, D = x.shape
    xf = x.reshape(-1, D)
    conf = -(jnp.sum(xf * xf, axis=1, keepdims=True)
             - 2.0 * xf @ embed.T
             + jnp.sum(embed * embed, axis=1)[None, :])
    idx = jnp.argmax(conf, axis=-1)
    q = embed[idx].reshape(B, T, D)
    p = jax.nn.softmax(conf / temperature, axis=1)
    cp = jnp.mean(p, axis=0)
    loss = jnp.sum(cp * jnp.log(cp + 1e-6))
    return q, idx.reshape(B, T), loss


if __name__ == "__main__":
    # Module config: dim=32, codebook_size=128 (small, consistent with the module __init__).
    dim = 32
    codebook_size = 128
    B, T = 2, 8

    key = jax.random.PRNGKey(0)
    k_embed, k_x = jax.random.split(key)
    # embed buffer initialized with normal_init(codebook_size, dim)
    embed = jax.random.normal(k_embed, (codebook_size, dim), dtype=jnp.float32)
    x = jax.random.normal(k_x, (B, T, dim), dtype=jnp.float32)

    quantize, embed_ind, diversity_loss = euclidean_codebook_forward(x, embed)
    jax.block_until_ready((quantize, embed_ind, diversity_loss))

    # sanity check against a plain-JAX reference of the same math
    q_ref, ind_ref, loss_ref = _reference_forward(x, embed)
    assert quantize.shape == (B, T, dim) and quantize.dtype == jnp.float32
    assert embed_ind.shape == (B, T)
    assert jnp.all(embed_ind == ind_ref)
    assert jnp.allclose(quantize, q_ref, atol=1e-4, rtol=1e-4)
    # loss tolerance slightly loosened: softmax denominator uses approx EUP reciprocal
    assert jnp.allclose(diversity_loss, loss_ref, atol=2e-3, rtol=2e-3)

    print("KERNEL_OK")
</pallas_src>

<mosaic_0001>
module attributes {stable_mosaic.version = 11 : i64} {
  func.func @kernel(%arg0: i32, %arg1: memref<16x32xf32, #tpu.memory_space<vmem>>, %arg2: memref<128x32xf32, #tpu.memory_space<vmem>>, %arg3: memref<1x128xf32, #tpu.memory_space<vmem>>, %arg4: memref<16x32xf32, #tpu.memory_space<vmem>>, %arg5: memref<1x1x16xi32, #tpu.memory_space<vmem>>, %arg6: memref<1x1x128xf32, #tpu.memory_space<vmem>>) attributes {dimension_semantics = [#tpu.dimension_semantics<parallel>], iteration_bounds = array<i64: 1>, scalar_prefetch = 0 : i64, scratch_operands = 0 : i64, tpu.core_type = #tpu.core_type<tc>, window_params = [{transform_indices = @transform_0, window_bounds = array<i64: 16, 32>}, {pipeline_mode = #tpu.pipeline_mode<synchronous>, transform_indices = @transform_1, window_bounds = array<i64: 128, 32>}, {pipeline_mode = #tpu.pipeline_mode<synchronous>, transform_indices = @transform_2, window_bounds = array<i64: 1, 128>}, {transform_indices = @transform_3, window_bounds = array<i64: 16, 32>}, {transform_indices = @transform_4, window_bounds = array<i64: 1, 1, 16>}, {transform_indices = @transform_5, window_bounds = array<i64: 1, 1, 128>}]} {
    %c0 = arith.constant 0 : index
    %c0_0 = arith.constant 0 : index
    %0 = vector.load %arg1[%c0, %c0_0] : memref<16x32xf32, #tpu.memory_space<vmem>>, vector<16x32xf32>
    %c0_1 = arith.constant 0 : index
    %c0_2 = arith.constant 0 : index
    %1 = vector.load %arg2[%c0_1, %c0_2] : memref<128x32xf32, #tpu.memory_space<vmem>>, vector<128x32xf32>
    %c0_3 = arith.constant 0 : index
    %c0_4 = arith.constant 0 : index
    %2 = vector.load %arg3[%c0_3, %c0_4] : memref<1x128xf32, #tpu.memory_space<vmem>>, vector<1x128xf32>
    %cst = arith.constant dense<0.000000e+00> : vector<16x128xf32>
    %3 = tpu.matmul %0, %1, %cst {dimension_numbers = #tpu.dot_dimension_numbers<[1], [1], [0], [0], [0, 0, 1, 0], [], []>} : vector<16x32xf32>, vector<128x32xf32>, vector<16x128xf32> -> vector<16x128xf32>
    %cst_5 = arith.constant 2.22222233 : f32
    %4 = vector.broadcast %cst_5 : f32 to vector<16x128xf32>
    %5 = arith.mulf %3, %4 : vector<16x128xf32>
    %6 = vector.broadcast %2 : vector<1x128xf32> to vector<16x128xf32>
    %7 = arith.subf %5, %6 : vector<16x128xf32>
    %cst_6 = arith.constant dense<0xFF800000> : vector<16xf32>
    %8 = vector.multi_reduction <maximumf>, %7, %cst_6 [1] : vector<16x128xf32> to vector<16xf32>
    %9 = vector.shape_cast %8 : vector<16xf32> to vector<16x1xf32>
    %10 = tpu.iota {dimensions = array<i32: 1>} : vector<16x128xi32>
    %11 = vector.broadcast %9 : vector<16x1xf32> to vector<16x128xf32>
    %12 = arith.cmpf oeq, %7, %11 : vector<16x128xf32>
    %c128_i32 = arith.constant 128 : i32
    %13 = vector.broadcast %c128_i32 : i32 to vector<16x128xi32>
    %14 = arith.select %12, %10, %13 : vector<16x128xi1>, vector<16x128xi32>
    %cst_7 = arith.constant dense<2147483647> : vector<16xi32>
    %15 = vector.multi_reduction <minsi>, %14, %cst_7 [1] : vector<16x128xi32> to vector<16xi32>
    %16 = vector.shape_cast %15 : vector<16xi32> to vector<16x1xi32>
    %17 = vector.broadcast %16 : vector<16x1xi32> to vector<16x128xi32>
    %18 = arith.cmpi eq, %10, %17 : vector<16x128xi32>
    %19 = arith.extui %18 : vector<16x128xi1> to vector<16x128xi32>
    %20 = arith.sitofp %19 : vector<16x128xi32> to vector<16x128xf32>
    %cst_8 = arith.constant dense<0.000000e+00> : vector<16x32xf32>
    %21 = tpu.matmul %20, %1, %cst_8 {dimension_numbers = #tpu.dot_dimension_numbers<[1], [0], [0], [1], [0, 0, 1, 1], [], []>} : vector<16x128xf32>, vector<128x32xf32>, vector<16x32xf32> -> vector<16x32xf32>
    %c0_9 = arith.constant 0 : index
    %c0_10 = arith.constant 0 : index
    %22 = vector.load %arg4[%c0_9, %c0_10] : memref<16x32xf32, #tpu.memory_space<vmem>>, vector<16x32xf32>
    tpu.vector_store %arg4[%c0_9, %c0_10], %21 {strides = array<i32>} : memref<16x32xf32, #tpu.memory_space<vmem>>, vector<16x32xf32>,
    %23 = tpu.iota {dimensions = array<i32: 1>} : vector<1x128xi32>
    %24 = arith.sitofp %23 : vector<1x128xi32> to vector<1x128xf32>
    %cst_11 = arith.constant dense<0.000000e+00> : vector<1x16xf32>
    %25 = tpu.matmul %24, %20, %cst_11 {dimension_numbers = #tpu.dot_dimension_numbers<[1], [1], [0], [0], [0, 0, 1, 0], [], []>} : vector<1x128xf32>, vector<16x128xf32>, vector<1x16xf32> -> vector<1x16xf32>
    %cst_12 = arith.constant 5.000000e-01 : f32
    %26 = vector.broadcast %cst_12 : f32 to vector<1x16xf32>
    %27 = arith.addf %25, %26 : vector<1x16xf32>
    %28 = arith.fptosi %27 : vector<1x16xf32> to vector<1x16xi32>
    %29 = vector.shape_cast %28 : vector<1x16xi32> to vector<1x1x16xi32>
    %c0_13 = arith.constant 0 : index
    %c0_14 = arith.constant 0 : index
    %c0_15 = arith.constant 0 : index
    %30 = vector.load %arg5[%c0_13, %c0_14, %c0_15] : memref<1x1x16xi32, #tpu.memory_space<vmem>>, vector<1x1x16xi32>
    tpu.vector_store %arg5[%c0_13, %c0_14, %c0_15], %29 {strides = array<i32>} : memref<1x1x16xi32, #tpu.memory_space<vmem>>, vector<1x1x16xi32>,
    %31 = vector.broadcast %9 : vector<16x1xf32> to vector<16x128xf32>
    %32 = arith.subf %7, %31 : vector<16x128xf32>
    %33 = math.exp %32 : vector<16x128xf32>
    %cst_16 = arith.constant dense<0.000000e+00> : vector<16xf32>
    %34 = vector.multi_reduction <add>, %33, %cst_16 [1] : vector<16x128xf32> to vector<16xf32>
    %35 = vector.shape_cast %34 : vector<16xf32> to vector<16x1xf32>
    %36 = tpu.reciprocal %35 {approx = true} : vector<16x1xf32> -> vector<16x1xf32>
    %37 = vector.broadcast %36 : vector<16x1xf32> to vector<16x128xf32>
    %38 = arith.mulf %33, %37 : vector<16x128xf32>
    %cst_17 = arith.constant dense<0.000000e+00> : vector<128xf32>
    %39 = vector.multi_reduction <add>, %38, %cst_17 [0] : vector<16x128xf32> to vector<128xf32>
    %40 = vector.shape_cast %39 : vector<128xf32> to vector<1x128xf32>
    %41 = vector.shape_cast %40 : vector<1x128xf32> to vector<1x1x128xf32>
    %c0_18 = arith.constant 0 : index
    %c0_19 = arith.constant 0 : index
    %c0_20 = arith.constant 0 : index
    %42 = vector.load %arg6[%c0_18, %c0_19, %c0_20] : memref<1x1x128xf32, #tpu.memory_space<vmem>>, vector<1x1x128xf32>
    tpu.vector_store %arg6[%c0_18, %c0_19, %c0_20], %41 {strides = array<i32>} : memref<1x1x128xf32, #tpu.memory_space<vmem>>, vector<1x1x128xf32>,
    return
  }
  func.func @transform_0(%arg0: i32) -> (i32, i32) {
    %c0_i32 = arith.constant 0 : i32
    %c0_i32_0 = arith.constant 0 : i32
    return %arg0, %c0_i32 : i32, i32
  }
  func.func @transform_1(%arg0: i32) -> (i32, i32) {
    %c0_i32 = arith.constant 0 : i32
    %c0_i32_0 = arith.constant 0 : i32
    %c0_i32_1 = arith.constant 0 : i32
    return %c0_i32, %c0_i32_0 : i32, i32
  }
  func.func @transform_2(%arg0: i32) -> (i32, i32) {
    %c0_i32 = arith.constant 0 : i32
    %c0_i32_0 = arith.constant 0 : i32
    %c0_i32_1 = arith.constant 0 : i32
    return %c0_i32, %c0_i32_0 : i32, i32
  }
  func.func @transform_3(%arg0: i32) -> (i32, i32) {
    %c0_i32 = arith.constant 0 : i32
    %c0_i32_0 = arith.constant 0 : i32
    return %arg0, %c0_i32 : i32, i32
  }
  func.func @transform_4(%arg0: i32) -> (i32, i32, i32) {
    %c0_i32 = arith.constant 0 : i32
    %c0_i32_0 = arith.constant 0 : i32
    %c0_i32_1 = arith.constant 0 : i32
    return %arg0, %c0_i32, %c0_i32_0 : i32, i32, i32
  }
  func.func @transform_5(%arg0: i32) -> (i32, i32, i32) {
    %c0_i32 = arith.constant 0 : i32
    %c0_i32_0 = arith.constant 0 : i32
    %c0_i32_1 = arith.constant 0 : i32
    return %arg0, %c0_i32, %c0_i32_0 : i32, i32, i32
  }
}

</mosaic_0001>

<bundles_post_ra>
// kernel: tpu_custom_call.1
= control target key start
LH: loop header
LB: loop body
LE: loop exit
PB: predicated region body
PF: predicated region fallthrough
CT: control target
= control target key end

     0   :  { %11 = vsyncpa [#allocation3], 0  ;;  %vm38_vm0 = vcmask 261120   ;;  %s942_s0 = inlined_call_operand.vmem [shape: f32[16,32], index: 0, kind: input, shape index: {}]   ;;  %s943_s1 = inlined_call_operand.vmem [shape: f32[128,32], index: 1, kind: input, shape index: {}]   ;;  %s944_s2 = inlined_call_operand.vmem [shape: f32[1,128], index: 2, kind: input, shape index: {}]   ;;  %s945_s3 = inlined_call_operand.hbm [shape: f32[16,32], index: 3, kind: output, shape index: {0}]   ;;  %s946_s4 = inlined_call_operand.hbm [shape: s32[1,1,16], index: 4, kind: output, shape index: {1}]   ;;  %s947_s5 = inlined_call_operand.hbm [shape: f32[1,1,128], index: 5, kind: output, shape index: {2}]  }
   0x1   :  { %v21_v0 = vld [vmem:[%s943_s1] sm:$0xff]  ;;  %v22_v1 = vld [vmem:[%s943_s1 + $0x8] sm:$0xff]  ;;  %v23_v2 = vld [vmem:[%s943_s1 + $0x10] sm:$0xff] }
   0x2   :  { %v579_v3 = vpack.c.bf16 %v22_v1, %v21_v0  ;;  %vm803_vm1 = vmpackc.low %vm38_vm0, %vm38_vm0  ;;  %v24_v5 = vld [vmem:[%s943_s1 + $0x18] sm:$0xff]  ;;  %v25_v7 = vld [vmem:[%s943_s1 + $0x20] sm:$0xff] }
   0x3   :  { %v585_v6 = vpack.c.bf16 %v24_v5, %v23_v2  ;;  %v26_v8 = vld [vmem:[%s943_s1 + $0x28] sm:$0xff]  ;;  %v19_v9 = vld [vmem:[%s942_s0] sm:$0xff] }
   0x4   :  { %581 = vmatprep.subr.msk.bf16.mxu0 %vm803_vm1, %v579_v3  ;;  %628 = vmatprep.subr.bf16.mxu1 %v579_v3 }
   0x5   :  { %584 = vmatpush3.bf16.xpose.msk.msra.mxu0 %vm803_vm1, %v579_v3  ;;  %630 = vmatpush3.bf16.msra.mxu1 %v579_v3 }
   0x6   :  { %587 = vmatprep.subr.msk.bf16.mxu0 %vm803_vm1, %v585_v6  ;;  %632 = vmatprep.subr.bf16.mxu1 %v585_v6 }
   0x7   :  { %534 = vmatprep.mubr.msk.f32.mxu0 %vm38_vm0, %v19_v9 }
   0x8   :  { %12 = vsyncpa [#allocation5], 0  ;;  %v591_v10 = vpack.c.bf16 %v26_v8, %v25_v7  ;;  %v27_v11 = vld [vmem:[%s943_s1 + $0x30] sm:$0xff]  ;;  %v28_v12 = vld [vmem:[%s943_s1 + $0x38] sm:$0xff]  ;;  %v182_v34 = vlaneseq  ;;  %v752_v58 = vmov 0.0|0.0   ;;  %v753_v5 = vmov 1.0  }
   0x9   :  { %634 = vmatpush3.bf16.msra.mxu1 %v585_v6  ;;  %v597_v13 = vpack.c.bf16 %v28_v12, %v27_v11  ;;  %v29_v14 = vld [vmem:[%s943_s1 + $0x40] sm:$0xff]  ;;  %v30_v15 = vld [vmem:[%s943_s1 + $0x48] sm:$0xff]  ;;  %v31_v17 = vld [vmem:[%s943_s1 + $0x50] sm:$0xff]  ;;  %v754_v8 = vmov 1.0|1.0   ;;  %vm755_vm9 = vmmov 0  }
   0xa   :  { %636 = vmatprep.subr.bf16.mxu1 %v591_v10  ;;  %v603_v16 = vpack.c.bf16 %v30_v15, %v29_v14  ;;  %v32_v18 = vld [vmem:[%s943_s1 + $0x58] sm:$0xff]  ;;  %v33_v20 = vld [vmem:[%s943_s1 + $0x60] sm:$0xff]  ;;  %v34_v21 = vld [vmem:[%s943_s1 + $0x68] sm:$0xff]  ;;  %v889_v35 = vand.u32 127, %v182_v34  ;;  %v756_v9 = vmov 0.0  }
   0xb   :  { %v609_v19 = vpack.c.bf16 %v32_v18, %v31_v17  ;;  %v615_v22 = vpack.c.bf16 %v34_v21, %v33_v20  ;;  %v35_v23 = vld [vmem:[%s943_s1 + $0x70] sm:$0xff]  ;;  %v36_v24 = vld [vmem:[%s943_s1 + $0x78] sm:$0xff]  ;;  %v20_v26 = vld [vmem:[%s942_s0 + $0x8] sm:$0xff]  ;;  %s757_s0 = smov [#allocation2]  }
   0xc   :  { %v621_v25 = vpack.c.bf16 %v36_v24, %v35_v23  ;;  %v456_v28 = vld [vmem:[%s944_s2] ss:$0 sm:$0xff]  ;;  %s400_s2 = sshll.u32 %s757_s0, 4  ;;  %s401_s2 = int_to_ptr.vmem [resolvable:$true] %s400_s2 }
   0xd   :  { %590 = vmatpush3.bf16.xpose.msk.msra.mxu0 %vm803_vm1, %v585_v6  ;;  %638 = vmatpush3.bf16.msra.mxu1 %v591_v10  ;;  %s682_s30 = scalar_lea.vmem %s401_s2, 256  ;;  %p687_p1 = scmp.lt.s32.totalorder %s401_s2, %s401_s2 }
   0xe   :  { %593 = vmatprep.subr.msk.bf16.mxu0 %vm803_vm1, %v591_v10  ;;  %640 = vmatprep.subr.bf16.mxu1 %v597_v13  ;;  %p683_p0 = scmp.ne.s32.totalorder %s401_s2, %s682_s30  ;;  %p688_p2 = scmp.lt.s32.totalorder %s682_s30, %s682_s30 }
  0x10   :  { %p689_p3 = por %p688_p2, %p687_p1 }
  0x11   :  { %642 = vmatpush3.bf16.msra.mxu1 %v597_v13 }
  0x12   :  { %644 = vmatprep.subr.bf16.mxu1 %v603_v16  ;;  %p690_p4 = pnand %p689_p3, %p683_p0 }
  0x15   :  { %596 = vmatpush3.bf16.xpose.msk.msra.mxu0 %vm803_vm1, %v591_v10  ;;  %646 = vmatpush3.bf16.msra.mxu1 %v603_v16  ;;  %v299_v10 = vcvt.s32.f32 %v889_v35 }
  0x16   :  { %599 = vmatprep.subr.msk.bf16.mxu0 %vm803_vm1, %v597_v13  ;;  %648 = vmatprep.subr.bf16.mxu1 %v609_v19 }
  0x19   :  { %650 = vmatpush3.bf16.msra.mxu1 %v609_v19 }
  0x1a   :  { %652 = vmatprep.subr.bf16.mxu1 %v615_v22 }
  0x1d   :  { %602 = vmatpush3.bf16.xpose.msk.msra.mxu0 %vm803_vm1, %v597_v13  ;;  %654 = vmatpush3.bf16.msra.mxu1 %v615_v22 }
  0x1e   :  { %605 = vmatprep.subr.msk.bf16.mxu0 %vm803_vm1, %v603_v16  ;;  %656 = vmatprep.subr.bf16.mxu1 %v621_v25 }
  0x21   :  { %658 = vmatpush3.bf16.msra.mxu1 %v621_v25 }
  0x22   :  { %659 = vmatprep.subr.bf16.mxu1 %v752_v58 }
  0x25   :  { %608 = vmatpush3.bf16.xpose.msk.msra.mxu0 %vm803_vm1, %v603_v16 }
  0x26   :  { %611 = vmatprep.subr.msk.bf16.mxu0 %vm803_vm1, %v609_v19 }
  0x2d   :  { %614 = vmatpush3.bf16.xpose.msk.msra.mxu0 %vm803_vm1, %v609_v19 }
  0x2e   :  { %617 = vmatprep.subr.msk.bf16.mxu0 %vm803_vm1, %v615_v22 }
  0x35   :  { %620 = vmatpush3.bf16.xpose.msk.msra.mxu0 %vm803_vm1, %v615_v22 }
  0x36   :  { %623 = vmatprep.subr.msk.bf16.mxu0 %vm803_vm1, %v621_v25 }
  0x3d   :  { %626 = vmatpush3.bf16.xpose.msk.msra.mxu0 %vm803_vm1, %v621_v25 }
  0x44   :  { %535 = vmatmul.mubr.msk.f32.vlgmr.msra.gmra.mrb[0].mxu0 %vm38_vm0, %v20_v26 }
 0x117   :  { %v536_v27 = vpop.f32.mrb[0].mxu0 }
 0x118   :  { %v159_v29 = vpop.f32.mrb[1].mxu0  ;;  %v169_v31 = vmul.f32 2.2222223, %v536_v27 }
 0x119   :  { %v168_v30 = vmul.f32 2.2222223, %v159_v29 }
 0x11a   :  { %v177_v33 = vsub.f32 %v169_v31, %v456_v28 }
 0x11b   :  { %v176_v32 = vsub.f32 %v168_v30, %v456_v28 }
 0x11d   :  { %178 = vmax.xlane.f32.xlu0 %v176_v32 }
 0x121   :  { %180 = vmax.xlane.f32.xlu0 %v177_v33 }
 0x1aa   :  { %v179_v36 = vpop.xlane.xlu0 %178 }
 0x1ab   :  { %vm184_vm2 = vcmp.eq.f32.partialorder %v176_v32, %v179_v36  ;;  %v373_v44 = vsub.f32 %v176_v32, %v179_v36 }
 0x1ac   :  { %v186_v37 = vsel %vm184_vm2, %v889_v35, 128 }
 0x1ad   :  { %v189_v38 = vshra.s32 %v186_v37, 16  ;;  %v375_v45 = vmul.f32 1.442695, %v373_v44  ;;  %v188_v48 = vand.u32 65535, %v186_v37 }
 0x1ae   :  { %v181_v39 = vpop.xlane.xlu0 %180 }
 0x1af   :  { %vm185_vm3 = vcmp.eq.f32.partialorder %v177_v33, %v181_v39  ;;  %v191_v40 = vcvt.s32.f32 %v189_v38  ;;  %v374_v46 = vsub.f32 %v177_v33, %v181_v39  ;;  %674 = vpow2.f32 %v375_v45 }
 0x1b0   :  { %v187_v41 = vsel %vm185_vm3, %v889_v35, 128  ;;  %v190_v50 = vcvt.s32.f32 %v188_v48 }
 0x1b1   :  { %192 = vmin.xlane.f32.xlu1 %v191_v40  ;;  %v203_v42 = vshra.s32 %v187_v41, 16  ;;  %v377_v47 = vmul.f32 1.442695, %v374_v46  ;;  %v202_v51 = vand.u32 65535, %v187_v41 }
 0x1b3   :  { %v205_v43 = vcvt.s32.f32 %v203_v42  ;;  %676 = vpow2.f32 %v377_v47  ;;  %v204_v54 = vcvt.s32.f32 %v202_v51 }
 0x1b5   :  { %206 = vmin.xlane.f32.xlu1 %v205_v43 }
 0x1b9   :  { %v675_v55 = vpop.eup %674 }
 0x1bd   :  { %v677_v57 = vpop.eup %676 }
 0x23e   :  { %v193_v49 = vpop.xlane.xlu1 %192 }
 0x23f   :  { %vm194_vm4 = vcmp.eq.f32.partialorder %v191_v40, %v193_v49  ;;  %v199_v59 = vcvt.f32.s32 %v193_v49 }
 0x240   :  { %v195_v52 = vsel %vm194_vm4, %v190_v50, inf }
 0x241   :  { %196 = vmin.xlane.f32.xlu0 %v195_v52  ;;  %v200_v61 = vshll.u32 %v199_v59, 16 }
 0x242   :  { %v207_v53 = vpop.xlane.xlu1 %206 }
 0x243   :  { %vm208_vm5 = vcmp.eq.f32.partialorder %v205_v43, %v207_v53  ;;  %v213_v62 = vcvt.f32.s32 %v207_v53 }
 0x244   :  { %v209_v56 = vsel %vm208_vm5, %v204_v54, inf }
 0x245   :  { %379 = vadd.xlane.f32.xlu0 %v675_v55  ;;  %210 = vmin.xlane.f32.xlu1 %v209_v56  ;;  %v214_v3 = vshll.u32 %v213_v62, 16 }
 0x249   :  { %381 = vadd.xlane.f32.xlu1 %v677_v57 }
 0x2ce   :  { %v197_v60 = vpop.xlane.xlu0 %196 }
 0x2cf   :  { %v198_v63 = vcvt.f32.s32 %v197_v60 }
 0x2d1   :  { %v201_v0 = vadd.s32 %v200_v61, %v198_v63 }
 0x2d2   :  { %v211_v1 = vpop.xlane.xlu1 %210  ;;  %v380_v2 = vpop.xlane.xlu0 %379 }
 0x2d3   :  { %v212_v4 = vcvt.f32.s32 %v211_v1  ;;  %vm216_vm6 = vcmp.eq.s32.totalorder %v889_v35, %v201_v0  ;;  %678 = vrcp.f32 %v380_v2 }
 0x2d4   :  { %569 = vmatprep.mubr.msk.f32.mxu1 %vm216_vm6, %v753_v5 }
 0x2d5   :  { %v215_v6 = vadd.s32 %v214_v3, %v212_v4 }
 0x2d6   :  { %v382_v7 = vpop.xlane.xlu1 %381 }
 0x2d7   :  { %vm217_vm7 = vcmp.eq.s32.totalorder %v889_v35, %v215_v6  ;;  %680 = vrcp.f32 %v382_v7 }
 0x2d8   :  { %vm660_vm8 = vmpackc.low %vm217_vm7, %vm216_vm6  ;;  %570 = vmatmul.mubr.msk.f32.vlgmr.msra.gmra.mrb[0].mxu1 %vm217_vm7, %v753_v5 }
 0x2d9   :  { %661 = vmatpush3.bf16.xpose.msk.msra.mxu1 %vm660_vm8, %v754_v8  ;;  %576 = vmatprep.mubr.msk.f32.mxu1 %vm755_vm9, %v756_v9 }
 0x2dd   :  { %v679_v11 = vpop.eup %678 }
 0x2de   :  { %v385_v13 = vmul.f32 %v679_v11, %v675_v55 }
 0x2e0   :  { %577 = vmatmul.mubr.f32.vlgmr.msra.gmra.mrb[2].mxu1 %v299_v10 }
 0x2e1   :  { %v681_v12 = vpop.eup %680 }
 0x2e2   :  { %v386_v14 = vmul.f32 %v681_v12, %v677_v57 }
 0x2e4   :  { %v387_v15 = vadd.f32 %v386_v14, %v385_v13 }
 0x2e6   :  { %v388_v16 = vrot.slane %v387_v15, 4 }
 0x2e8   :  { %v389_v17 = vadd.f32 %v388_v16, %v387_v15 }
 0x2ea   :  { %v390_v18 = vrot.slane %v389_v17, 2 }
 0x2ec   :  { %v391_v19 = vadd.f32 %v390_v18, %v389_v17 }
 0x2ee   :  { %v392_v20 = vrot.slane %v391_v19, 1 }
 0x2f0   :  { %v393_v21 = vadd.f32 %v392_v20, %v391_v19 }
 0x2f2   :  { %394 = vst [vmem:[#allocation6] sm:$0x1] %v393_v21 }
 0x3ab   :  { %v571_v22 = vpop.f32.mrb[0].mxu1 }
 0x3ac   :  { %298 = vst.msk [vmem:[#allocation2 + $0x8] sm:$0xff] %vm38_vm0, %v571_v22  ;;  %v288_v23 = vpop.f32.mrb[1].mxu1 }
 0x3ad   :  { %297 = vst.msk [vmem:[#allocation2] sm:$0xff] %vm38_vm0, %v288_v23 }
 0x3ae   :  { %693 = shalt.err (!%p690_p4)
}
 0x3af   :  { %s694_s8 = scalar_lea.hbm %s945_s3, 256 }
 0x3b0   :  { %p695_p5 = scmp.ne.s32.totalorder %s945_s3, %s694_s8  ;;  %p698_p6 = scmp.lt.u32.totalorder %s694_s8, %s945_s3 }
 0x3b2   :  { %p700_p7 = pnand %p698_p6, %p695_p5 }
 0x3b4   :  { %703 = shalt.err (!%p700_p7)
}
 0x3b5   :  { %s758_s13 = smov 128   ;;  %s759_s14 = smov 8   ;;  %v366_v24 = vpop.f32.mrb[2].mxu1  ;;  %vm371_vm10 = vcmask 122880  }
 0x3b6   :  { %406 = dma.vmem_to_hbm [thread:$0]  %s401_s2, 256, %s945_s3, [#allocation3], %s758_s13, %s758_s13, %s759_s14   ;;  %v367_v25 = vadd.f32 0.5, %v366_v24  ;;  %v578_v26 = vpop.f32.mrb[3].mxu1 }
 0x3b7   :  { %s760_s17 = smov [#allocation4]   ;;  %s761_s19 = smov [#allocation6]  }
 0x3b8   :  { %s413_s18 = sshll.u32 %s760_s17, 4  ;;  %v662_v27 = vtrunc.f32 %v367_v25  ;;  %s423_s20 = sshll.u32 %s761_s19, 4  ;;  %s414_s18 = int_to_ptr.vmem [resolvable:$true] %s413_s18  ;;  %s910_s20 = int_to_ptr.vmem [resolvable:$true] %s423_s20 }
 0x3b9   :  { %s704_s21 = scalar_lea.vmem %s414_s18, 16  ;;  %s708_s22 = scalar_lea.vmem %s414_s18, 32 }
 0x3ba   :  { %v663_v28 = vcvt.f32.s32 %v662_v27  ;;  %p705_p8 = scmp.ne.s32.totalorder %s414_s18, %s704_s21  ;;  %p709_p9 = scmp.lt.s32.totalorder %s414_s18, %s414_s18 }
 0x3bb   :  { %p710_p10 = scmp.lt.s32.totalorder %s708_s22, %s704_s21 }
 0x3bc   :  { %372 = vst.msk [vmem:[#allocation4] sm:$0x1] %vm371_vm10, %v663_v28 }
 0x3bd   :  { %p711_p11 = por %p710_p10, %p709_p9 }
 0x3bf   :  { %p712_p12 = pnand %p711_p11, %p705_p8 }
 0x3c1   :  { %715 = shalt.err (!%p712_p12)
}
 0x3c2   :  { %s716_s24 = scalar_lea.hbm %s946_s4, 16 }
 0x3c3   :  { %p717_p13 = scmp.ne.s32.totalorder %s946_s4, %s716_s24  ;;  %p720_p0 = scmp.lt.u32.totalorder %s716_s24, %s946_s4 }
 0x3c5   :  { %p722_p1 = pnand %p720_p0, %p717_p13 }
 0x3c7   :  { %725 = shalt.err (!%p722_p1)
}
 0x3c8   :  { %416 = dma.vmem_to_hbm [thread:$0]  %s414_s18, 16, %s946_s4, [#allocation5]  }
 0x3c9   :  { %s726_s0 = scalar_lea.vmem %s910_s20, 16  ;;  %s730_s2 = scalar_lea.vmem %s910_s20, 32 }
 0x3ca   :  { %p727_p2 = scmp.ne.s32.totalorder %s910_s20, %s726_s0  ;;  %p731_p3 = scmp.lt.s32.totalorder %s910_s20, %s910_s20 }
 0x3cb   :  { %p732_p4 = scmp.lt.s32.totalorder %s730_s2, %s726_s0 }
 0x3cd   :  { %p733_p5 = por %p732_p4, %p731_p3 }
 0x3cf   :  { %p734_p6 = pnand %p733_p5, %p727_p2 }
 0x3d1   :  { %737 = shalt.err (!%p734_p6)
}
 0x3d2   :  { %s738_s7 = scalar_lea.hbm %s947_s5, 16 }
 0x3d3   :  { %p739_p7 = scmp.ne.s32.totalorder %s947_s5, %s738_s7  ;;  %p742_p8 = scmp.lt.u32.totalorder %s738_s7, %s947_s5 }
 0x3d5   :  { %p744_p9 = pnand %p742_p8, %p739_p7 }
 0x3d7   :  { %747 = shalt.err (!%p744_p9)
}
 0x3d8   :  { %426 = dma.vmem_to_hbm [thread:$0]  %s910_s20, 16, %s947_s5, [#allocation5]  }
 0x3d9   :  { %748 = dma.done.wait [#allocation3], 256  }
 0x3da   :  { %749 = vsyncadd [#allocation3], 4294967040 }
 0x3db   :  { %750 = dma.done.wait [#allocation5], 32  }
 0x3dc   :  { %751 = vsyncadd [#allocation5], 4294967264 }
 0x3dd   :  { %436 = vsyncpa [#allocation3], 1 }
 0x3de   :  { %437 = vsyncpa [#allocation5], 1 }

</bundles_post_ra>
